<compile_context>
chip_gen: v6e
topology: v6e:2x2x1
jax: 0.10.0
libtpu: 0.0.40
codegen_flags: <defaults>
</compile_context>

<pallas_src>
import jax
import jax.numpy as jnp
import numpy as np
from jax.experimental import pallas as pl
from jax.experimental.pallas import tpu as pltpu

# ---- small, module-consistent shapes ----
N = 128        # input_size (number of nodes; module uses 410, scaled down)
D = 2          # latent_dim
AR = 3         # AR_order
T = 4          # number of graph snapshots batched into one kernel launch
E_MAX = 128    # lane-padded max edges per snapshot (multiple of 128)

_DIAG_DIST = (float(D) ** 0.5) * 1e-6   # diagonal distance induced by the +1e-6 offset


def lsm_forward_kernel(counts_ref,                       # SMEM scalar prefetch: (T,) int32
                       z_ref, zT_ref, g_row_ref, eg_col_ref,
                       ziT_ref, zjT_ref, gi_ref, gj_ref,
                       out_ref):
    """Per-snapshot log_lik = link_likelihood - non_link_likelihood."""
    t = pl.program_id(0)

    # ---- non-link likelihood: N x N pairwise block ----
    z = z_ref[...]          # (N, D)  row view
    zT = zT_ref[...]        # (D, N)  lane-dense column view (pre-transposed in wrapper)
    g_row = g_row_ref[...]  # (1, N)

    sq = None
    for d in range(D):      # D is tiny and static; unrolled
        dif = z[:, d:d + 1] - zT[d:d + 1, :] + 1e-6          # (N, N) broadcast on VPU
        term = dif * dif
        sq = term if sq is None else sq + term               # (N, N)
    dist = jnp.sqrt(sq)                                      # (N, N)

    # weighted_ij = exp(g_i) * exp(g_j - d_ij): only a sublane broadcast of g_row,
    # then a lane reduce; the exp(g_i) column factor is applied to the (N,1) row sums.
    a = jnp.exp(g_row - dist)                                # (N, N), one EUP exp/elem
    row_sums = jnp.sum(a, axis=-1, keepdims=True)            # (N, 1)  XLU lane reduce
    full_sum = jnp.sum(eg_col_ref[...] * row_sums)           # scalar (includes diagonal)

    # Analytic diagonal correction: d_ii = sqrt(D)*1e-6, so diag term = exp(2*g_i - d_ii).
    diag_sum = jnp.sum(jnp.exp(2.0 * g_row - _DIAG_DIST))    # scalar, one (1,N) exp
    non_link = 0.5 * (full_sum - diag_sum)

    # ---- link likelihood (edge term), lane-major (D, E_MAX) / (1, E_MAX), masked ----
    esq = None
    for d in range(D):
        ed = ziT_ref[d:d + 1, :] - zjT_ref[d:d + 1, :] + 1e-6    # (1, E_MAX)
        eterm = ed * ed
        esq = eterm if esq is None else esq + eterm
    edge_term = -jnp.sqrt(esq) + gi_ref[...] + gj_ref[...]       # (1, E_MAX)

    lane = jax.lax.broadcasted_iota(jnp.int32, (1, E_MAX), 1)
    cnt = counts_ref[t]
    edge_term = jnp.where(lane < cnt, edge_term, 0.0)            # zero padded lanes
    link = jnp.sum(edge_term)                                    # scalar

    # Full-tile (8,128) unmasked store; wrapper reads [0,0].
    out_ref[...] = jnp.broadcast_to(link - non_link, (8, 128)).astype(jnp.float32)


@jax.jit
def lsm_forward_batched(Z_stack, gamma, edge_i, edge_j, edge_counts):
    """Batched Pallas implementation of LSM.forward over T graph snapshots.

    Z_stack:     (T, N, D) float  — latent positions per snapshot
    gamma:       (N,)      float  — node sociability (shared across snapshots)
    edge_i/j:    (T, E_MAX) int32 — lane-padded edge index lists (pad value 0)
    edge_counts: (T,)       int32 — true #edges per snapshot
    returns:     (T,) float32     — per-snapshot log-likelihood
    """
    Z = Z_stack.astype(jnp.float32)
    g = gamma.astype(jnp.float32)
    T_ = Z.shape[0]

    # Jitted glue: gathers / tiny transposes fuse with the kernel launch.
    ZT = jnp.swapaxes(Z, 1, 2)                                   # (T, D, N)
    zi = jax.vmap(lambda zz, idx: zz[idx])(Z, edge_i)            # (T, E_MAX, D)
    zj = jax.vmap(lambda zz, idx: zz[idx])(Z, edge_j)            # (T, E_MAX, D)
    ziT = jnp.swapaxes(zi, 1, 2)                                 # (T, D, E_MAX)
    zjT = jnp.swapaxes(zj, 1, 2)                                 # (T, D, E_MAX)
    gi = g[edge_i][:, None, :]                                   # (T, 1, E_MAX)
    gj = g[edge_j][:, None, :]                                   # (T, 1, E_MAX)
    g_row = g[None, :]                                           # (1, N)
    eg_col = jnp.exp(g)[:, None]                                 # (N, 1)

    grid_spec = pltpu.PrefetchScalarGridSpec(
        num_scalar_prefetch=1,                                   # edge_counts -> SMEM
        grid=(T_,),
        in_specs=[
            pl.BlockSpec((None, N, D), lambda t, c: (t, 0, 0)),        # Z  (row view)
            pl.BlockSpec((None, D, N), lambda t, c: (t, 0, 0)),        # Z^T (col view)
            pl.BlockSpec((1, N), lambda t, c: (0, 0)),                 # gamma row
            pl.BlockSpec((N, 1), lambda t, c: (0, 0)),                 # exp(gamma) col
            pl.BlockSpec((None, D, E_MAX), lambda t, c: (t, 0, 0)),    # z[edge_i]^T
            pl.BlockSpec((None, D, E_MAX), lambda t, c: (t, 0, 0)),    # z[edge_j]^T
            pl.BlockSpec((None, 1, E_MAX), lambda t, c: (t, 0, 0)),    # gamma[edge_i]
            pl.BlockSpec((None, 1, E_MAX), lambda t, c: (t, 0, 0)),    # gamma[edge_j]
        ],
        out_specs=pl.BlockSpec((None, 8, 128), lambda t, c: (t, 0, 0)),
    )

    out = pl.pallas_call(
        lsm_forward_kernel,
        out_shape=jax.ShapeDtypeStruct((T_, 8, 128), jnp.float32),
        grid_spec=grid_spec,
        compiler_params=pltpu.CompilerParams(
            dimension_semantics=("parallel",)),                  # 2 TCs on v7x
    )(edge_counts.astype(jnp.int32), Z, ZT, g_row, eg_col, ziT, zjT, gi, gj)

    return out[:, 0, 0]                                          # (T,)


def lsm_forward_ref(z, gamma, ei, ej):
    """Pure-JAX reference mirroring the PyTorch forward exactly (one snapshot)."""
    diff = z[:, None, :] - z[None, :, :] + 1e-6
    dist = jnp.exp(-jnp.sqrt(jnp.sum(diff * diff, axis=-1)))
    dist = dist - jnp.diag(jnp.diag(dist))
    eg = jnp.exp(gamma)
    non_link = 0.5 * (eg[None, :] @ (dist @ eg[:, None]))        # (1, 1)
    ed = jnp.sqrt(jnp.sum((z[ei] - z[ej] + 1e-6) ** 2, axis=-1))
    link = jnp.sum(-ed + gamma[ei] + gamma[ej])
    return (link - non_link)[0, 0]


if __name__ == "__main__":
    key = jax.random.PRNGKey(0)
    k_gamma, k_bias, k_alpha, k_z, k_pert = jax.random.split(key, 5)

    # Deterministic synthetic parameters (shapes from LSM.__init__ / init_latent_series).
    gamma = jax.random.normal(k_gamma, (N,), jnp.float32)              # self.gamma
    AR_bias = jax.random.normal(k_bias, (N, D), jnp.float32)           # self.AR_bias
    Alpha = jax.random.normal(k_alpha, (AR, D, D), jnp.float32)        # MATRIX_TYPE='full'
    latent_z = jax.random.normal(k_z, (N, D), jnp.float32)             # self.latent_z
    # init_latent_series(): Z_series = latent_z repeated AR_order times along axis 1
    Z_series = jnp.repeat(latent_z[:, None, :], AR, axis=1)            # (N, AR, D)

    # AR_Process, MATRIX_TYPE='full', t=0 step (plain-JAX glue; tiny D x D matmuls):
    Z_t0 = jnp.einsum("nad,ade->ne", Z_series, Alpha) + AR_bias        # (N, D)
    # Remaining snapshots: deterministic perturbations standing in for later AR steps.
    perturb = 0.1 * jax.random.normal(k_pert, (T - 1, N, D), jnp.float32)
    Z_stack = jnp.concatenate([Z_t0[None], Z_t0[None] + perturb], 0)   # (T, N, D)

    # Per-snapshot edge index lists (stand-in for graph_snaps[t]._indices()),
    # lane-padded to E_MAX with index 0; true counts vary per snapshot.
    counts_np = np.array([32, 57, 1, 96], dtype=np.int32)
    rng = np.random.default_rng(0)
    ei_np = np.zeros((T, E_MAX), np.int32)
    ej_np = np.zeros((T, E_MAX), np.int32)
    for t in range(T):
        c = int(counts_np[t])
        ei_np[t, :c] = rng.integers(0, N, size=c)
        ej_np[t, :c] = rng.integers(0, N, size=c)
    edge_i = jnp.asarray(ei_np)
    edge_j = jnp.asarray(ej_np)
    edge_counts = jnp.asarray(counts_np)

    out = jax.block_until_ready(
        lsm_forward_batched(Z_stack, gamma, edge_i, edge_j, edge_counts))

    ref = jnp.stack([
        lsm_forward_ref(Z_stack[t], gamma,
                        edge_i[t, :int(counts_np[t])],
                        edge_j[t, :int(counts_np[t])])
        for t in range(T)
    ])
    ref = jax.block_until_ready(ref)

    assert out.shape == (T,)
    np.testing.assert_allclose(np.asarray(out), np.asarray(ref), rtol=2e-3, atol=1e-2)
    print("KERNEL_OK")
</pallas_src>

<mosaic_0001>
module attributes {stable_mosaic.version = 11 : i64} {
  func.func @lsm_forward_kernel(%arg0: i32, %arg1: memref<4xi32, #tpu.memory_space<smem>>, %arg2: memref<1x128x2xf32, #tpu.memory_space<vmem>>, %arg3: memref<1x2x128xf32, #tpu.memory_space<vmem>>, %arg4: memref<1x128xf32, #tpu.memory_space<vmem>>, %arg5: memref<128x1xf32, #tpu.memory_space<vmem>>, %arg6: memref<1x2x128xf32, #tpu.memory_space<vmem>>, %arg7: memref<1x2x128xf32, #tpu.memory_space<vmem>>, %arg8: memref<1x1x128xf32, #tpu.memory_space<vmem>>, %arg9: memref<1x1x128xf32, #tpu.memory_space<vmem>>, %arg10: memref<1x8x128xf32, #tpu.memory_space<vmem>>) attributes {dimension_semantics = [#tpu.dimension_semantics<parallel>], iteration_bounds = array<i64: 4>, scalar_prefetch = 1 : i64, scratch_operands = 0 : i64, tpu.core_type = #tpu.core_type<tc>, window_params = [{transform_indices = @transform_0, window_bounds = array<i64: 1, 128, 2>}, {transform_indices = @transform_1, window_bounds = array<i64: 1, 2, 128>}, {pipeline_mode = #tpu.pipeline_mode<synchronous>, transform_indices = @transform_2, window_bounds = array<i64: 1, 128>}, {pipeline_mode = #tpu.pipeline_mode<synchronous>, transform_indices = @transform_3, window_bounds = array<i64: 128, 1>}, {transform_indices = @transform_4, window_bounds = array<i64: 1, 2, 128>}, {transform_indices = @transform_5, window_bounds = array<i64: 1, 2, 128>}, {transform_indices = @transform_6, window_bounds = array<i64: 1, 1, 128>}, {transform_indices = @transform_7, window_bounds = array<i64: 1, 1, 128>}, {transform_indices = @transform_8, window_bounds = array<i64: 1, 8, 128>}]} {
    %c0 = arith.constant 0 : index
    %c0_0 = arith.constant 0 : index
    %c0_1 = arith.constant 0 : index
    %0 = vector.load %arg2[%c0, %c0_0, %c0_1] : memref<1x128x2xf32, #tpu.memory_space<vmem>>, vector<1x128x2xf32>
    %1 = vector.shape_cast %0 : vector<1x128x2xf32> to vector<128x2xf32>
    %c0_2 = arith.constant 0 : index
    %c0_3 = arith.constant 0 : index
    %c0_4 = arith.constant 0 : index
    %2 = vector.load %arg3[%c0_2, %c0_3, %c0_4] : memref<1x2x128xf32, #tpu.memory_space<vmem>>, vector<1x2x128xf32>
    %3 = vector.shape_cast %2 : vector<1x2x128xf32> to vector<2x128xf32>
    %c0_5 = arith.constant 0 : index
    %c0_6 = arith.constant 0 : index
    %4 = vector.load %arg4[%c0_5, %c0_6] : memref<1x128xf32, #tpu.memory_space<vmem>>, vector<1x128xf32>
    %5 = vector.extract_strided_slice %1 {offsets = [0, 0], sizes = [128, 1], strides = [1, 1]} : vector<128x2xf32> to vector<128x1xf32>
    %6 = vector.extract_strided_slice %3 {offsets = [0, 0], sizes = [1, 128], strides = [1, 1]} : vector<2x128xf32> to vector<1x128xf32>
    %7 = vector.broadcast %5 : vector<128x1xf32> to vector<128x128xf32>
    %8 = vector.broadcast %6 : vector<1x128xf32> to vector<128x128xf32>
    %9 = arith.subf %7, %8 : vector<128x128xf32>
    %cst = arith.constant 9.99999997E-7 : f32
    %10 = vector.broadcast %cst : f32 to vector<128x128xf32>
    %11 = arith.addf %9, %10 : vector<128x128xf32>
    %12 = arith.mulf %11, %11 : vector<128x128xf32>
    %13 = vector.extract_strided_slice %1 {offsets = [0, 1], sizes = [128, 1], strides = [1, 1]} : vector<128x2xf32> to vector<128x1xf32>
    %14 = vector.extract_strided_slice %3 {offsets = [1, 0], sizes = [1, 128], strides = [1, 1]} : vector<2x128xf32> to vector<1x128xf32>
    %15 = vector.broadcast %13 : vector<128x1xf32> to vector<128x128xf32>
    %16 = vector.broadcast %14 : vector<1x128xf32> to vector<128x128xf32>
    %17 = arith.subf %15, %16 : vector<128x128xf32>
    %cst_7 = arith.constant 9.99999997E-7 : f32
    %18 = vector.broadcast %cst_7 : f32 to vector<128x128xf32>
    %19 = arith.addf %17, %18 : vector<128x128xf32>
    %20 = arith.mulf %19, %19 : vector<128x128xf32>
    %21 = arith.addf %12, %20 : vector<128x128xf32>
    %22 = math.sqrt %21 : vector<128x128xf32>
    %23 = vector.broadcast %4 : vector<1x128xf32> to vector<128x128xf32>
    %24 = arith.subf %23, %22 : vector<128x128xf32>
    %25 = math.exp %24 : vector<128x128xf32>
    %cst_8 = arith.constant dense<0.000000e+00> : vector<128xf32>
    %26 = vector.multi_reduction <add>, %25, %cst_8 [1] : vector<128x128xf32> to vector<128xf32>
    %27 = vector.shape_cast %26 : vector<128xf32> to vector<128x1xf32>
    %c0_9 = arith.constant 0 : index
    %c0_10 = arith.constant 0 : index
    %28 = vector.load %arg5[%c0_9, %c0_10] : memref<128x1xf32, #tpu.memory_space<vmem>>, vector<128x1xf32>
    %29 = arith.mulf %28, %27 : vector<128x1xf32>
    %30 = vector.shape_cast %29 : vector<128x1xf32> to vector<1x128x1xf32>
    %cst_11 = arith.constant dense<0.000000e+00> : vector<1xf32>
    %31 = vector.multi_reduction <add>, %30, %cst_11 [1, 2] : vector<1x128x1xf32> to vector<1xf32>
    %32 = vector.shape_cast %31 : vector<1xf32> to vector<1x1x1xf32>
    %33 = vector.extract %32[0, 0, 0] : f32 from vector<1x1x1xf32>
    %cst_12 = arith.constant 2.000000e+00 : f32
    %34 = vector.broadcast %cst_12 : f32 to vector<1x128xf32>
    %35 = arith.mulf %34, %4 : vector<1x128xf32>
    %cst_13 = arith.constant 1.41421356E-6 : f32
    %36 = vector.broadcast %cst_13 : f32 to vector<1x128xf32>
    %37 = arith.subf %35, %36 : vector<1x128xf32>
    %38 = math.exp %37 : vector<1x128xf32>
    %39 = vector.shape_cast %38 : vector<1x128xf32> to vector<1x1x128xf32>
    %cst_14 = arith.constant dense<0.000000e+00> : vector<1xf32>
    %40 = vector.multi_reduction <add>, %39, %cst_14 [1, 2] : vector<1x1x128xf32> to vector<1xf32>
    %41 = vector.shape_cast %40 : vector<1xf32> to vector<1x1x1xf32>
    %42 = vector.extract %41[0, 0, 0] : f32 from vector<1x1x1xf32>
    %43 = arith.subf %33, %42 : f32
    %cst_15 = arith.constant 5.000000e-01 : f32
    %44 = arith.mulf %cst_15, %43 : f32
    %c0_16 = arith.constant 0 : index
    %c0_17 = arith.constant 0 : index
    %c0_18 = arith.constant 0 : index
    %45 = vector.load %arg6[%c0_16, %c0_17, %c0_18] : memref<1x2x128xf32, #tpu.memory_space<vmem>>, vector<1x1x128xf32>
    %46 = vector.shape_cast %45 : vector<1x1x128xf32> to vector<1x128xf32>
    %c0_19 = arith.constant 0 : index
    %c0_20 = arith.constant 0 : index
    %c0_21 = arith.constant 0 : index
    %47 = vector.load %arg7[%c0_19, %c0_20, %c0_21] : memref<1x2x128xf32, #tpu.memory_space<vmem>>, vector<1x1x128xf32>
    %48 = vector.shape_cast %47 : vector<1x1x128xf32> to vector<1x128xf32>
    %49 = arith.subf %46, %48 : vector<1x128xf32>
    %cst_22 = arith.constant 9.99999997E-7 : f32
    %50 = vector.broadcast %cst_22 : f32 to vector<1x128xf32>
    %51 = arith.addf %49, %50 : vector<1x128xf32>
    %52 = arith.mulf %51, %51 : vector<1x128xf32>
    %c0_23 = arith.constant 0 : index
    %c1 = arith.constant 1 : index
    %c0_24 = arith.constant 0 : index
    %53 = vector.load %arg6[%c0_23, %c1, %c0_24] : memref<1x2x128xf32, #tpu.memory_space<vmem>>, vector<1x1x128xf32>
    %54 = vector.shape_cast %53 : vector<1x1x128xf32> to vector<1x128xf32>
    %c0_25 = arith.constant 0 : index
    %c1_26 = arith.constant 1 : index
    %c0_27 = arith.constant 0 : index
    %55 = vector.load %arg7[%c0_25, %c1_26, %c0_27] : memref<1x2x128xf32, #tpu.memory_space<vmem>>, vector<1x1x128xf32>
    %56 = vector.shape_cast %55 : vector<1x1x128xf32> to vector<1x128xf32>
    %57 = arith.subf %54, %56 : vector<1x128xf32>
    %cst_28 = arith.constant 9.99999997E-7 : f32
    %58 = vector.broadcast %cst_28 : f32 to vector<1x128xf32>
    %59 = arith.addf %57, %58 : vector<1x128xf32>
    %60 = arith.mulf %59, %59 : vector<1x128xf32>
    %61 = arith.addf %52, %60 : vector<1x128xf32>
    %62 = math.sqrt %61 : vector<1x128xf32>
    %cst_29 = arith.constant 0.000000e+00 : f32
    %63 = vector.broadcast %cst_29 : f32 to vector<1x128xf32>
    %64 = arith.subf %63, %62 : vector<1x128xf32>
    %c0_30 = arith.constant 0 : index
    %c0_31 = arith.constant 0 : index
    %c0_32 = arith.constant 0 : index
    %65 = vector.load %arg8[%c0_30, %c0_31, %c0_32] : memref<1x1x128xf32, #tpu.memory_space<vmem>>, vector<1x1x128xf32>
    %66 = vector.shape_cast %65 : vector<1x1x128xf32> to vector<1x128xf32>
    %67 = arith.addf %64, %66 : vector<1x128xf32>
    %c0_33 = arith.constant 0 : index
    %c0_34 = arith.constant 0 : index
    %c0_35 = arith.constant 0 : index
    %68 = vector.load %arg9[%c0_33, %c0_34, %c0_35] : memref<1x1x128xf32, #tpu.memory_space<vmem>>, vector<1x1x128xf32>
    %69 = vector.shape_cast %68 : vector<1x1x128xf32> to vector<1x128xf32>
    %70 = arith.addf %67, %69 : vector<1x128xf32>
    %71 = tpu.iota {dimensions = array<i32: 1>} : vector<1x128xi32>
    %72 = arith.index_cast %arg0 : i32 to index
    %73 = memref.load %arg1[%72] : memref<4xi32, #tpu.memory_space<smem>>
    %74 = vector.broadcast %73 : i32 to vector<1x128xi32>
    %75 = arith.cmpi slt, %71, %74 : vector<1x128xi32>
    %cst_36 = arith.constant 0.000000e+00 : f32
    %76 = vector.broadcast %cst_36 : f32 to vector<1x128xf32>
    %77 = arith.select %75, %70, %76 : vector<1x128xi1>, vector<1x128xf32>
    %78 = vector.shape_cast %77 : vector<1x128xf32> to vector<1x1x128xf32>
    %cst_37 = arith.constant dense<0.000000e+00> : vector<1xf32>
    %79 = vector.multi_reduction <add>, %78, %cst_37 [1, 2] : vector<1x1x128xf32> to vector<1xf32>
    %80 = vector.shape_cast %79 : vector<1xf32> to vector<1x1x1xf32>
    %81 = vector.extract %80[0, 0, 0] : f32 from vector<1x1x1xf32>
    %82 = arith.subf %81, %44 : f32
    %83 = vector.broadcast %82 : f32 to vector<8x128xf32>
    %c0_38 = arith.constant 0 : index
    %c0_39 = arith.constant 0 : index
    %c0_40 = arith.constant 0 : index
    %84 = vector.load %arg10[%c0_38, %c0_39, %c0_40] : memref<1x8x128xf32, #tpu.memory_space<vmem>>, vector<1x8x128xf32>
    %85 = vector.shape_cast %84 : vector<1x8x128xf32> to vector<8x128xf32>
    %86 = vector.shape_cast %83 : vector<8x128xf32> to vector<1x8x128xf32>
    tpu.vector_store %arg10[%c0_38, %c0_39, %c0_40], %86 {strides = array<i32>} : memref<1x8x128xf32, #tpu.memory_space<vmem>>, vector<1x8x128xf32>,
    return
  }
  func.func @transform_0(%arg0: i32, %arg1: memref<4xi32, #tpu.memory_space<smem>>) -> (i32, i32, i32) {
    %c0_i32 = arith.constant 0 : i32
    %c0_i32_0 = arith.constant 0 : i32
    %c0_i32_1 = arith.constant 0 : i32
    return %arg0, %c0_i32, %c0_i32_0 : i32, i32, i32
  }
  func.func @transform_1(%arg0: i32, %arg1: memref<4xi32, #tpu.memory_space<smem>>) -> (i32, i32, i32) {
    %c0_i32 = arith.constant 0 : i32
    %c0_i32_0 = arith.constant 0 : i32
    %c0_i32_1 = arith.constant 0 : i32
    return %arg0, %c0_i32, %c0_i32_0 : i32, i32, i32
  }
  func.func @transform_2(%arg0: i32, %arg1: memref<4xi32, #tpu.memory_space<smem>>) -> (i32, i32) {
    %c0_i32 = arith.constant 0 : i32
    %c0_i32_0 = arith.constant 0 : i32
    %c0_i32_1 = arith.constant 0 : i32
    return %c0_i32, %c0_i32_0 : i32, i32
  }
  func.func @transform_3(%arg0: i32, %arg1: memref<4xi32, #tpu.memory_space<smem>>) -> (i32, i32) {
    %c0_i32 = arith.constant 0 : i32
    %c0_i32_0 = arith.constant 0 : i32
    %c0_i32_1 = arith.constant 0 : i32
    return %c0_i32, %c0_i32_0 : i32, i32
  }
  func.func @transform_4(%arg0: i32, %arg1: memref<4xi32, #tpu.memory_space<smem>>) -> (i32, i32, i32) {
    %c0_i32 = arith.constant 0 : i32
    %c0_i32_0 = arith.constant 0 : i32
    %c0_i32_1 = arith.constant 0 : i32
    return %arg0, %c0_i32, %c0_i32_0 : i32, i32, i32
  }
  func.func @transform_5(%arg0: i32, %arg1: memref<4xi32, #tpu.memory_space<smem>>) -> (i32, i32, i32) {
    %c0_i32 = arith.constant 0 : i32
    %c0_i32_0 = arith.constant 0 : i32
    %c0_i32_1 = arith.constant 0 : i32
    return %arg0, %c0_i32, %c0_i32_0 : i32, i32, i32
  }
  func.func @transform_6(%arg0: i32, %arg1: memref<4xi32, #tpu.memory_space<smem>>) -> (i32, i32, i32) {
    %c0_i32 = arith.constant 0 : i32
    %c0_i32_0 = arith.constant 0 : i32
    %c0_i32_1 = arith.constant 0 : i32
    return %arg0, %c0_i32, %c0_i32_0 : i32, i32, i32
  }
  func.func @transform_7(%arg0: i32, %arg1: memref<4xi32, #tpu.memory_space<smem>>) -> (i32, i32, i32) {
    %c0_i32 = arith.constant 0 : i32
    %c0_i32_0 = arith.constant 0 : i32
    %c0_i32_1 = arith.constant 0 : i32
    return %arg0, %c0_i32, %c0_i32_0 : i32, i32, i32
  }
  func.func @transform_8(%arg0: i32, %arg1: memref<4xi32, #tpu.memory_space<smem>>) -> (i32, i32, i32) {
    %c0_i32 = arith.constant 0 : i32
    %c0_i32_0 = arith.constant 0 : i32
    %c0_i32_1 = arith.constant 0 : i32
    return %arg0, %c0_i32, %c0_i32_0 : i32, i32, i32
  }
}

</mosaic_0001>

<bundles_post_ra>
// kernel: lsm_forward_batched.1
= control target key start
LH: loop header
LB: loop body
LE: loop exit
PB: predicated region body
PF: predicated region fallthrough
CT: control target
= control target key end

     0   :  { %s1654_s0 = inlined_call_operand.vmem [shape: s32[4], index: 0, kind: input, shape index: {}]   ;;  %s1655_s1 = inlined_call_operand.vmem [shape: f32[4,128,2], index: 1, kind: input, shape index: {}]   ;;  %s1656_s2 = inlined_call_operand.vmem [shape: f32[4,2,128], index: 2, kind: input, shape index: {}]   ;;  %s1657_s3 = inlined_call_operand.vmem [shape: f32[1,128], index: 3, kind: input, shape index: {}]   ;;  %s1658_s4 = inlined_call_operand.vmem [shape: f32[128,1], index: 4, kind: input, shape index: {}]   ;;  %s1659_s5 = inlined_call_operand.vmem [shape: f32[4,2,128], index: 5, kind: input, shape index: {}]   ;;  %s1660_s6 = inlined_call_operand.vmem [shape: f32[4,2,128], index: 6, kind: input, shape index: {}]   ;;  %s1661_s7 = inlined_call_operand.vmem [shape: f32[4,1,128], index: 7, kind: input, shape index: {}]   ;;  %s1662_s8 = inlined_call_operand.vmem [shape: f32[4,1,128], index: 8, kind: input, shape index: {}]   ;;  %s1663_s9 = inlined_call_operand.vmem [shape: f32[4,8,128], index: 9, kind: output, shape index: {}]  }
   0x1   :  { %s14_s11 = sshll.u32 %s1654_s0, 4  ;;  %s15_s11 = int_to_ptr.vmem [resolvable:$true] %s14_s11 }
   0x2   :  { %s1212_s12 = scalar_lea.vmem %s15_s11, 16  ;;  %p1217_p1 = scmp.lt.s32.totalorder %s15_s11, %s15_s11 }
   0x3   :  { %p1213_p0 = scmp.ne.s32.totalorder %s15_s11, %s1212_s12  ;;  %p1218_p2 = scmp.lt.s32.totalorder %s1212_s12, %s1212_s12 }
   0x5   :  { %p1219_p3 = por %p1218_p2, %p1217_p1 }
   0x7   :  { %p1220_p4 = pnand %p1219_p3, %p1213_p0 }
   0x9   :  { %1223 = shalt.err (!%p1220_p4)  }
   0xa   :  { %s1234_s13 = smov [#allocation3]  }
   0xb   :  { %17 = dma.vmem_to_smem %s15_s11, 16, %s1234_s13, [#allocation2] }
   0xc   :  { %1228 = dma.done.wait [#allocation2], 16 }
   0xd   :  { %1229 = vsyncadd [#allocation2], 4294967280 }
   0xe   :  { %19 = sfence }
   0xf   :  { %s1290_s14 = smov 0  }
  0x10 LB: > { %s1296_s0 = sadd.s32 4294967295, %s1232_s14   ;;  %p1113_p5 = scmp.ge.s32.totalorder %s1232_s14, 1  ;;  %s1232_s14 = sphi %s1290_s14, %s25_s14  }
  0x11   : > { %p312_p6 = scmp.lt.s32.totalorder %s1232_s14, 5 }
  0x13   : > { %p313_p7 = pnand %p1113_p5, %p312_p6 }
  0x14   : > { %p363_p8 = scmp.lt.s32.totalorder (!%p313_p7), %s1296_s0, 3  ;;  %s985_s25 = sld [smem:[#allocation3 + %s1296_s0]] (!%p313_p7) }
  0x15   : > { %316 = sbr.rel (%p313_p7) target bundleno = 611 (0x263), region = 52 }
  0x1a   : > { %v1235_v0 = vmov 1   ;;  %v1236_v1 = vmov 0   ;;  %s1302_s15 = scalar_select %p363_p8, %s1296_s0, 3  ;;  %v488_v18 = vlaneseq }
  0x1b   : > { %1142 = vset.pattern.permute.xlu1 %v1235_v0  ;;  %1141 = vset.pattern.permute.xlu0 %v1236_v1 }
  0x1c   : > { %s1123_s16 = sshll.u32 %s1302_s15, 7  ;;  %s1327_s20 = sshll.u32 %s1302_s15, 1  ;;  %v489_v19 = vshrl.u32 %v488_v18, 7 }
  0x1d   : > { %s1308_s19 = scalar_lea.vmem %s1655_s1, %s1123_s16  ;;  %s371_s23 = scalar_lea.vmem %s1656_s2, %s1327_s20 }
  0x1e   : > { %v390_v2 = vld [vmem:[%s1308_s19] sm:$0xff]  ;;  %v391_v3 = vld [vmem:[%s1308_s19 + $0x8] sm:$0xff]  ;;  %v392_v4 = vld [vmem:[%s1308_s19 + $0x10] sm:$0xff]  ;;  %v490_v20 = vsub.s32 0, %v489_v19  ;;  %v606_v21 = vsub.s32 1, %v489_v19  ;;  %s375_s28 = scalar_lea.vmem %s1659_s5, %s1327_s20  ;;  %s379_s10 = scalar_lea.vmem %s1660_s6, %s1327_s20 }
  0x1f   : > { %541 = vperm.xlu1 %1142, %v390_v2   ;;  %410 = vperm.xlu0 %1141, %v390_v2   ;;  %v393_v5 = vld [vmem:[%s1308_s19 + $0x18] sm:$0xff]  ;;  %v394_v6 = vld [vmem:[%s1308_s19 + $0x20] sm:$0xff]  ;;  %v395_v7 = vld [vmem:[%s1308_s19 + $0x28] sm:$0xff]  ;;  %s382_s24 = scalar_lea.vmem %s1661_s7, %s1302_s15  ;;  %s1119_s16 = sshll.u32 %s1302_s15, 3 }
  0x20   : > { %v396_v8 = vld [vmem:[%s1308_s19 + $0x30] sm:$0xff]  ;;  %v397_v9 = vld [vmem:[%s1308_s19 + $0x38] sm:$0xff]  ;;  %v398_v10 = vld [vmem:[%s1308_s19 + $0x40] sm:$0xff]  ;;  %s389_s21 = scalar_lea.vmem %s1663_s9, %s1119_s16 }
  0x21   : > { %v399_v11 = vld [vmem:[%s1308_s19 + $0x48] sm:$0xff]  ;;  %v400_v12 = vld [vmem:[%s1308_s19 + $0x50] sm:$0xff]  ;;  %v401_v13 = vld [vmem:[%s1308_s19 + $0x58] sm:$0xff] }
  0x22   : > { %v402_v14 = vld [vmem:[%s1308_s19 + $0x60] sm:$0xff]  ;;  %v403_v15 = vld [vmem:[%s1308_s19 + $0x68] sm:$0xff]  ;;  %v404_v16 = vld [vmem:[%s1308_s19 + $0x70] sm:$0xff] }
  0x23   : > { %545 = vperm.xlu1 %1142, %v391_v3   ;;  %415 = vperm.xlu0 %1141, %v391_v3   ;;  %v405_v17 = vld [vmem:[%s1308_s19 + $0x78] sm:$0xff]  ;;  %v406_v22 = vld [vmem:[%s371_s23] sm:$0x3] }
  0x24   : > { %v1334_v23 = vrot.slane %v406_v22, %v490_v20  ;;  %v1336_v24 = vrot.slane %v406_v22, %v606_v21 }
  0x27   : > { %549 = vperm.xlu1 %1142, %v392_v4   ;;  %420 = vperm.xlu0 %1141, %v392_v4  }
  0x2b   : > { %553 = vperm.xlu1 %1142, %v393_v5   ;;  %425 = vperm.xlu0 %1141, %v393_v5  }
  0x2f   : > { %557 = vperm.xlu1 %1142, %v394_v6   ;;  %430 = vperm.xlu0 %1141, %v394_v6  }
  0x33   : > { %561 = vperm.xlu1 %1142, %v395_v7   ;;  %435 = vperm.xlu0 %1141, %v395_v7  }
  0x37   : > { %565 = vperm.xlu1 %1142, %v396_v8   ;;  %440 = vperm.xlu0 %1141, %v396_v8  }
  0x3b   : > { %569 = vperm.xlu1 %1142, %v397_v9   ;;  %445 = vperm.xlu0 %1141, %v397_v9  }
  0x3f   : > { %573 = vperm.xlu1 %1142, %v398_v10   ;;  %450 = vperm.xlu0 %1141, %v398_v10  }
  0x43   : > { %577 = vperm.xlu1 %1142, %v399_v11   ;;  %455 = vperm.xlu0 %1141, %v399_v11  }
  0x47   : > { %581 = vperm.xlu1 %1142, %v400_v12   ;;  %460 = vperm.xlu0 %1141, %v400_v12  }
  0x4b   : > { %585 = vperm.xlu1 %1142, %v401_v13   ;;  %465 = vperm.xlu0 %1141, %v401_v13  }
  0x4f   : > { %589 = vperm.xlu1 %1142, %v402_v14   ;;  %470 = vperm.xlu0 %1141, %v402_v14  }
  0x53   : > { %593 = vperm.xlu1 %1142, %v403_v15   ;;  %475 = vperm.xlu0 %1141, %v403_v15  }
  0x57   : > { %597 = vperm.xlu1 %1142, %v404_v16   ;;  %480 = vperm.xlu0 %1141, %v404_v16  }
  0x5b   : > { %601 = vperm.xlu1 %1142, %v405_v17   ;;  %485 = vperm.xlu0 %1141, %v405_v17  }
  0x5f   : > { %1143 = vset.pattern.permute.xlu0 %v1235_v0  ;;  %v1360_v0 = vld [vmem:[%s1657_s3] sm:$0x1] }
  0x60   : > { %v1367_v10 = vrot.slane %v1360_v0, %v490_v20 }
  0x9a   : > { %v542_v25 = vpop.permute.xlu1 %541  ;;  %v411_v26 = vpop.permute.xlu0 %410 }
  0x9b   : > { %v608_v27 = vsub.f32 %v542_v25, %v1336_v24  ;;  %v492_v28 = vsub.f32 %v411_v26, %v1334_v23 }
  0x9d   : > { %v624_v29 = vadd.f32 1e-06, %v608_v27  ;;  %v508_v30 = vadd.f32 1e-06, %v492_v28 }
  0x9e   : > { %v546_v31 = vpop.permute.xlu1 %545  ;;  %v416_v32 = vpop.permute.xlu0 %415 }
  0x9f   : > { %v640_v33 = vmul.f32 %v624_v29, %v624_v29  ;;  %v524_v34 = vmul.f32 %v508_v30, %v508_v30  ;;  %v609_v35 = vsub.f32 %v546_v31, %v1336_v24  ;;  %v493_v36 = vsub.f32 %v416_v32, %v1334_v23 }
  0xa1   : > { %v1342_v37 = vadd.f32 %v640_v33, %v524_v34  ;;  %v625_v38 = vadd.f32 1e-06, %v609_v35  ;;  %v509_v39 = vadd.f32 1e-06, %v493_v36 }
  0xa2   : > { %v550_v40 = vpop.permute.xlu1 %549  ;;  %v421_v41 = vpop.permute.xlu0 %420 }
  0xa3   : > { %1144 = vrsqrt.f32 %v1342_v37  ;;  %v641_v42 = vmul.f32 %v625_v38, %v625_v38  ;;  %v525_v43 = vmul.f32 %v509_v39, %v509_v39  ;;  %v610_v44 = vsub.f32 %v550_v40, %v1336_v24 }
  0xa4   : > { %v494_v45 = vsub.f32 %v421_v41, %v1334_v23  ;;  %vm674_vm0 = vcmp.eq.f32.partialorder %v1342_v37, inf  ;;  %vm676_vm1 = vcmp.eq.f32.partialorder %v1342_v37, 0.0  ;;  %v677_v19 = vand.u32 2147483648, %v1342_v37 }
  0xa5   : > { %v1347_v46 = vadd.f32 %v641_v42, %v525_v43  ;;  %v626_v47 = vadd.f32 1e-06, %v610_v44 }
  0xa6   : > { %v510_v48 = vadd.f32 1e-06, %v494_v45  ;;  %v554_v49 = vpop.permute.xlu1 %553  ;;  %v426_v50 = vpop.permute.xlu0 %425 }
  0xa7   : > { %1146 = vrsqrt.f32 %v1347_v46  ;;  %v642_v51 = vmul.f32 %v626_v47, %v626_v47  ;;  %v611_v52 = vsub.f32 %v554_v49, %v1336_v24  ;;  %v495_v53 = vsub.f32 %v426_v50, %v1334_v23 }
  0xa8   : > { %v526_v54 = vmul.f32 %v510_v48, %v510_v48  ;;  %vm681_vm2 = vcmp.eq.f32.partialorder %v1347_v46, inf  ;;  %vm683_vm3 = vcmp.eq.f32.partialorder %v1347_v46, 0.0  ;;  %v684_v28 = vand.u32 2147483648, %v1347_v46 }
  0xa9   : > { %v627_v55 = vadd.f32 1e-06, %v611_v52  ;;  %v511_v56 = vadd.f32 1e-06, %v495_v53 }
  0xaa   : > { %v1352_v57 = vadd.f32 %v642_v51, %v526_v54  ;;  %v558_v58 = vpop.permute.xlu1 %557  ;;  %v431_v59 = vpop.permute.xlu0 %430 }
  0xab   : > { %v643_v60 = vmul.f32 %v627_v55, %v627_v55  ;;  %v527_v61 = vmul.f32 %v511_v56, %v511_v56  ;;  %v612_v62 = vsub.f32 %v558_v58, %v1336_v24  ;;  %v496_v63 = vsub.f32 %v431_v59, %v1334_v23 }
  0xac   : > { %1148 = vrsqrt.f32 %v1352_v57  ;;  %vm688_vm4 = vcmp.eq.f32.partialorder %v1352_v57, inf  ;;  %vm690_vm5 = vcmp.eq.f32.partialorder %v1352_v57, 0.0  ;;  %v691_v38 = vand.u32 2147483648, %v1352_v57 }
  0xad   : > { %v1362_v1 = vadd.f32 %v643_v60, %v527_v61  ;;  %v628_v2 = vadd.f32 1e-06, %v612_v62  ;;  %v512_v3 = vadd.f32 1e-06, %v496_v63 }
  0xae   : > { %v562_v4 = vpop.permute.xlu1 %561  ;;  %v436_v5 = vpop.permute.xlu0 %435 }
  0xaf   : > { %1150 = vrsqrt.f32 %v1362_v1  ;;  %v644_v6 = vmul.f32 %v628_v2, %v628_v2  ;;  %v528_v7 = vmul.f32 %v512_v3, %v512_v3  ;;  %v613_v8 = vsub.f32 %v562_v4, %v1336_v24 }
  0xb0   : > { %v1145_v9 = vpop.eup %1144  ;;  %v497_v11 = vsub.f32 %v436_v5, %v1334_v23  ;;  %vm695_vm6 = vcmp.eq.f32.partialorder %v1362_v1, inf  ;;  %vm697_vm7 = vcmp.eq.f32.partialorder %v1362_v1, 0.0  ;;  %v698_v54 = vand.u32 2147483648, %v1362_v1 }
  0xb1   : > { %v673_v12 = vmul.f32 %v1145_v9, %v1342_v37  ;;  %v1372_v13 = vadd.f32 %v644_v6, %v528_v7  ;;  %v629_v14 = vadd.f32 1e-06, %v613_v8 }
  0xb2   : > { %v513_v15 = vadd.f32 1e-06, %v497_v11  ;;  %v566_v16 = vpop.permute.xlu1 %565  ;;  %v441_v17 = vpop.permute.xlu0 %440 }
  0xb3   : > { %1152 = vrsqrt.f32 %v1372_v13  ;;  %v645_v20 = vmul.f32 %v629_v14, %v629_v14  ;;  %v614_v21 = vsub.f32 %v566_v16, %v1336_v24  ;;  %v498_v22 = vsub.f32 %v441_v17, %v1334_v23 }
  0xb4   : > { %v1147_v25 = vpop.eup %1146  ;;  %v529_v26 = vmul.f32 %v513_v15, %v513_v15  ;;  %v675_v27 = vsel %vm674_vm0, %v1342_v37, %v673_v12  ;;  %vm702_vm8 = vcmp.eq.f32.partialorder %v1372_v13, inf  ;;  %vm704_vm9 = vcmp.eq.f32.partialorder %v1372_v13, 0.0 }
  0xb5   : > { %v680_v29 = vmul.f32 %v1147_v25, %v1347_v46  ;;  %v630_v30 = vadd.f32 1e-06, %v614_v21  ;;  %v514_v31 = vadd.f32 1e-06, %v498_v22  ;;  %v678_v32 = vsel %vm676_vm1, %v677_v19, %v675_v27 }
  0xb6   : > { %v1389_v33 = vadd.f32 %v645_v20, %v529_v26  ;;  %v570_v34 = vpop.permute.xlu1 %569  ;;  %v446_v35 = vpop.permute.xlu0 %445  ;;  %v790_v36 = vsub.f32 %v1367_v10, %v678_v32  ;;  %v705_v8 = vand.u32 2147483648, %v1372_v13 }
  0xb7   : > { %v646_v39 = vmul.f32 %v630_v30, %v630_v30  ;;  %v530_v40 = vmul.f32 %v514_v31, %v514_v31  ;;  %v615_v41 = vsub.f32 %v570_v34, %v1336_v24  ;;  %v499_v42 = vsub.f32 %v446_v35, %v1334_v23 }
  0xb8   : > { %1154 = vrsqrt.f32 %v1389_v33  ;;  %v806_v37 = vmul.f32 1.442695, %v790_v36  ;;  %v682_v43 = vsel %vm681_vm2, %v1347_v46, %v680_v29  ;;  %vm709_vm10 = vcmp.eq.f32.partialorder %v1389_v33, inf }
  0xb9   : > { %v1149_v44 = vpop.eup %1148  ;;  %v1402_v45 = vadd.f32 %v646_v39, %v530_v40  ;;  %v631_v47 = vadd.f32 1e-06, %v615_v41  ;;  %v515_v48 = vadd.f32 1e-06, %v499_v42  ;;  %v685_v49 = vsel %vm683_vm3, %v684_v28, %v682_v43 }
  0xba   : > { %v687_v50 = vmul.f32 %v1149_v44, %v1352_v57  ;;  %v574_v51 = vpop.permute.xlu1 %573  ;;  %v451_v52 = vpop.permute.xlu0 %450  ;;  %1156 = vpow2.f32 %v806_v37  ;;  %v791_v53 = vsub.f32 %v1367_v10, %v685_v49  ;;  %vm711_vm11 = vcmp.eq.f32.partialorder %v1389_v33, 0.0 }
  0xbb   : > { %1158 = vrsqrt.f32 %v1402_v45  ;;  %v647_v55 = vmul.f32 %v631_v47, %v631_v47  ;;  %v531_v56 = vmul.f32 %v515_v48, %v515_v48  ;;  %v616_v58 = vsub.f32 %v574_v51, %v1336_v24 }
  0xbc   : > { %v1151_v59 = vpop.eup %1150  ;;  %v500_v46 = vsub.f32 %v451_v52, %v1334_v23  ;;  %v808_v60 = vmul.f32 1.442695, %v791_v53  ;;  %v689_v61 = vsel %vm688_vm4, %v1352_v57, %v687_v50  ;;  %v712_v28 = vand.u32 2147483648, %v1389_v33 }
  0xbd   : > { %v694_v62 = vmul.f32 %v1151_v59, %v1362_v1  ;;  %v1418_v63 = vadd.f32 %v647_v55, %v531_v56  ;;  %v632_v2 = vadd.f32 1e-06, %v616_v58  ;;  %v692_v3 = vsel %vm690_vm5, %v691_v38, %v689_v61 }
  0xbe   : > { %v516_v4 = vadd.f32 1e-06, %v500_v46  ;;  %v578_v5 = vpop.permute.xlu1 %577  ;;  %v456_v6 = vpop.permute.xlu0 %455  ;;  %1160 = vpow2.f32 %v808_v60  ;;  %v792_v7 = vsub.f32 %v1367_v10, %v692_v3  ;;  %vm716_vm12 = vcmp.eq.f32.partialorder %v1402_v45, inf }
  0xbf   : > { %1162 = vrsqrt.f32 %v1418_v63  ;;  %v648_v9 = vmul.f32 %v632_v2, %v632_v2  ;;  %v617_v11 = vsub.f32 %v578_v5, %v1336_v24  ;;  %v501_v12 = vsub.f32 %v456_v6, %v1334_v23 }
  0xc0   : > { %v1153_v14 = vpop.eup %1152  ;;  %v532_v57 = vmul.f32 %v516_v4, %v516_v4  ;;  %v810_v15 = vmul.f32 1.442695, %v792_v7  ;;  %v696_v16 = vsel %vm695_vm6, %v1362_v1, %v694_v62  ;;  %vm718_vm13 = vcmp.eq.f32.partialorder %v1402_v45, 0.0 }
  0xc1   : > { %v701_v17 = vmul.f32 %v1153_v14, %v1372_v13  ;;  %v633_v19 = vadd.f32 1e-06, %v617_v11  ;;  %v517_v20 = vadd.f32 1e-06, %v501_v12  ;;  %v699_v21 = vsel %vm697_vm7, %v698_v54, %v696_v16 }
  0xc2   : > { %v1435_v22 = vadd.f32 %v648_v9, %v532_v57  ;;  %v582_v25 = vpop.permute.xlu1 %581  ;;  %v461_v26 = vpop.permute.xlu0 %460  ;;  %1164 = vpow2.f32 %v810_v15  ;;  %v793_v27 = vsub.f32 %v1367_v10, %v699_v21  ;;  %v719_v44 = vand.u32 2147483648, %v1402_v45 }
  0xc3   : > { %v649_v29 = vmul.f32 %v633_v19, %v633_v19  ;;  %v533_v30 = vmul.f32 %v517_v20, %v517_v20  ;;  %v618_v31 = vsub.f32 %v582_v25, %v1336_v24  ;;  %v502_v32 = vsub.f32 %v461_v26, %v1334_v23 }
  0xc4   : > { %1166 = vrsqrt.f32 %v1435_v22  ;;  %v812_v1 = vmul.f32 1.442695, %v793_v27  ;;  %v703_v34 = vsel %vm702_vm8, %v1372_v13, %v701_v17  ;;  %vm723_vm14 = vcmp.eq.f32.partialorder %v1418_v63, inf }
  0xc5   : > { %v1155_v35 = vpop.eup %1154  ;;  %v1447_v36 = vadd.f32 %v649_v29, %v533_v30  ;;  %v634_v38 = vadd.f32 1e-06, %v618_v31  ;;  %v518_v39 = vadd.f32 1e-06, %v502_v32  ;;  %v706_v40 = vsel %vm704_vm9, %v705_v8, %v703_v34 }
  0xc6   : > { %v708_v41 = vmul.f32 %v1155_v35, %v1389_v33  ;;  %v586_v42 = vpop.permute.xlu1 %585  ;;  %v466_v37 = vpop.permute.xlu0 %465  ;;  %1168 = vpow2.f32 %v812_v1  ;;  %v794_v43 = vsub.f32 %v1367_v10, %v706_v40  ;;  %vm725_vm15 = vcmp.eq.f32.partialorder %v1418_v63, 0.0 }
  0xc7   : > { %v1157_v47 = vpop.eup %1156  ;;  %1170 = vrsqrt.f32 %v1447_v36  ;;  %v650_v48 = vmul.f32 %v634_v38, %v634_v38  ;;  %v534_v49 = vmul.f32 %v518_v39, %v518_v39  ;;  %v619_v50 = vsub.f32 %v586_v42, %v1336_v24 }
  0xc8   : > { %v1159_v13 = vpop.eup %1158  ;;  %v503_v51 = vsub.f32 %v466_v37, %v1334_v23  ;;  %838 = vadd.xlane.f32.xlu0 %v1157_v47  ;;  %v814_v52 = vmul.f32 1.442695, %v794_v43  ;;  %v710_v53 = vsel %vm709_vm10, %v1389_v33, %v708_v41  ;;  %v726_v62 = vand.u32 2147483648, %v1418_v63 }
  0xc9   : > { %v715_v54 = vmul.f32 %v1159_v13, %v1402_v45  ;;  %v1463_v55 = vadd.f32 %v650_v48, %v534_v49  ;;  %v635_v56 = vadd.f32 1e-06, %v619_v50  ;;  %v713_v58 = vsel %vm711_vm11, %v712_v28, %v710_v53 }
  0xca   : > { %v519_v59 = vadd.f32 1e-06, %v503_v51  ;;  %v590_v46 = vpop.permute.xlu1 %589  ;;  %v471_v60 = vpop.permute.xlu0 %470  ;;  %1172 = vpow2.f32 %v814_v52  ;;  %v795_v61 = vsub.f32 %v1367_v10, %v713_v58  ;;  %vm730_vm0 = vcmp.eq.f32.partialorder %v1435_v22, inf }
  0xcb   : > { %v1161_v2 = vpop.eup %1160  ;;  %1174 = vrsqrt.f32 %v1463_v55  ;;  %v651_v3 = vmul.f32 %v635_v56, %v635_v56  ;;  %v620_v4 = vsub.f32 %v590_v46, %v1336_v24  ;;  %v504_v5 = vsub.f32 %v471_v60, %v1334_v23 }
  0xcc   : > { %v1163_v6 = vpop.eup %1162  ;;  %v535_v7 = vmul.f32 %v519_v59, %v519_v59  ;;  %840 = vadd.xlane.f32.xlu1 %v1161_v2  ;;  %v816_v33 = vmul.f32 1.442695, %v795_v61  ;;  %v717_v8 = vsel %vm716_vm12, %v1402_v45, %v715_v54  ;;  %vm732_vm1 = vcmp.eq.f32.partialorder %v1435_v22, 0.0 }
  0xcd   : > { %v722_v9 = vmul.f32 %v1163_v6, %v1418_v63  ;;  %v636_v11 = vadd.f32 1e-06, %v620_v4  ;;  %v520_v12 = vadd.f32 1e-06, %v504_v5  ;;  %v720_v14 = vsel %vm718_vm13, %v719_v44, %v717_v8 }
  0xce   : > { %v1479_v57 = vadd.f32 %v651_v3, %v535_v7  ;;  %v594_v15 = vpop.permute.xlu1 %593  ;;  %v476_v16 = vpop.permute.xlu0 %475  ;;  %1176 = vpow2.f32 %v816_v33  ;;  %v796_v17 = vsub.f32 %v1367_v10, %v720_v14  ;;  %v733_v28 = vand.u32 2147483648, %v1435_v22 }
  0xcf   : > { %v1165_v19 = vpop.eup %1164  ;;  %v652_v20 = vmul.f32 %v636_v11, %v636_v11  ;;  %v536_v21 = vmul.f32 %v520_v12, %v520_v12  ;;  %v621_v25 = vsub.f32 %v594_v15, %v1336_v24  ;;  %v505_v26 = vsub.f32 %v476_v16, %v1334_v23 }
  0xd0   : > { %1178 = vrsqrt.f32 %v1479_v57  ;;  %842 = vadd.xlane.f32.xlu0 %v1165_v19  ;;  %v818_v45 = vmul.f32 1.442695, %v796_v17  ;;  %v724_v27 = vsel %vm723_vm14, %v1418_v63, %v722_v9  ;;  %vm737_vm2 = vcmp.eq.f32.partialorder %v1447_v36, inf }
  0xd1   : > { %v1167_v29 = vpop.eup %1166  ;;  %v1490_v30 = vadd.f32 %v652_v20, %v536_v21  ;;  %v637_v31 = vadd.f32 1e-06, %v621_v25  ;;  %v521_v32 = vadd.f32 1e-06, %v505_v26  ;;  %v727_v1 = vsel %vm725_vm15, %v726_v62, %v724_v27 }
  0xd2   : > { %v729_v34 = vmul.f32 %v1167_v29, %v1435_v22  ;;  %v598_v35 = vpop.permute.xlu1 %597  ;;  %v481_v38 = vpop.permute.xlu0 %480  ;;  %1180 = vpow2.f32 %v818_v45  ;;  %v797_v39 = vsub.f32 %v1367_v10, %v727_v1  ;;  %vm739_vm3 = vcmp.eq.f32.partialorder %v1447_v36, 0.0 }
  0xd3   : > { %v1169_v40 = vpop.eup %1168  ;;  %1182 = vrsqrt.f32 %v1490_v30  ;;  %v653_v41 = vmul.f32 %v637_v31, %v637_v31  ;;  %v537_v42 = vmul.f32 %v521_v32, %v521_v32  ;;  %v622_v37 = vsub.f32 %v598_v35, %v1336_v24 }
  0xd4   : > { %v1171_v43 = vpop.eup %1170  ;;  %v506_v63 = vsub.f32 %v481_v38, %v1334_v23  ;;  %844 = vadd.xlane.f32.xlu0 %v1169_v40  ;;  %v820_v44 = vmul.f32 1.442695, %v797_v39  ;;  %v731_v47 = vsel %vm730_vm0, %v1435_v22, %v729_v34  ;;  %v740_v56 = vand.u32 2147483648, %v1447_v36 }
  0xd5   : > { %v736_v48 = vmul.f32 %v1171_v43, %v1447_v36  ;;  %v1505_v49 = vadd.f32 %v653_v41, %v537_v42  ;;  %v638_v50 = vadd.f32 1e-06, %v622_v37  ;;  %v734_v13 = vsel %vm732_vm1, %v733_v28, %v731_v47 }
  0xd6   : > { %v522_v51 = vadd.f32 1e-06, %v506_v63  ;;  %v602_v52 = vpop.permute.xlu1 %601  ;;  %v486_v53 = vpop.permute.xlu0 %485  ;;  %1184 = vpow2.f32 %v820_v44  ;;  %v798_v54 = vsub.f32 %v1367_v10, %v734_v13  ;;  %vm744_vm4 = vcmp.eq.f32.partialorder %v1463_v55, inf }
  0xd7   : > { %v1173_v58 = vpop.eup %1172  ;;  %1186 = vrsqrt.f32 %v1505_v49  ;;  %v654_v59 = vmul.f32 %v638_v50, %v638_v50  ;;  %v623_v46 = vsub.f32 %v602_v52, %v1336_v24  ;;  %v507_v60 = vsub.f32 %v486_v53, %v1334_v23 }
  0xd8   : > { %v1175_v61 = vpop.eup %1174  ;;  %v538_v62 = vmul.f32 %v522_v51, %v522_v51  ;;  %846 = vadd.xlane.f32.xlu1 %v1173_v58  ;;  %v822_v22 = vmul.f32 1.442695, %v798_v54  ;;  %v738_v2 = vsel %vm737_vm2, %v1447_v36, %v736_v48  ;;  %v747_v7 = vand.u32 2147483648, %v1463_v55 }
  0xd9   : > { %v743_v3 = vmul.f32 %v1175_v61, %v1463_v55  ;;  %v639_v4 = vadd.f32 1e-06, %v623_v46  ;;  %v523_v5 = vadd.f32 1e-06, %v507_v60  ;;  %v741_v6 = vsel %vm739_vm3, %v740_v56, %v738_v2 }
  0xda   : > { %v1521_v24 = vadd.f32 %v654_v59, %v538_v62  ;;  %1188 = vpow2.f32 %v822_v22  ;;  %v799_v23 = vsub.f32 %v1367_v10, %v741_v6  ;;  %vm746_vm5 = vcmp.eq.f32.partialorder %v1463_v55, 0.0 }
  0xdb   : > { %v1177_v33 = vpop.eup %1176  ;;  %v655_v8 = vmul.f32 %v639_v4, %v639_v4  ;;  %v539_v9 = vmul.f32 %v523_v5, %v523_v5  ;;  %v745_v11 = vsel %vm744_vm4, %v1463_v55, %v743_v3  ;;  %vm751_vm6 = vcmp.eq.f32.partialorder %v1479_v57, inf }
  0xdc   : > { %1190 = vrsqrt.f32 %v1521_v24  ;;  %848 = vadd.xlane.f32.xlu0 %v1177_v33  ;;  %v824_v12 = vmul.f32 1.442695, %v799_v23  ;;  %v748_v36 = vsel %vm746_vm5, %v747_v7, %v745_v11  ;;  %v754_v21 = vand.u32 2147483648, %v1479_v57  ;;  %v961_v23 = vld [vmem:[%s379_s10] sm:$0x1] }
  0xdd   : > { %v1179_v14 = vpop.eup %1178  ;;  %v671_v15 = vadd.f32 %v655_v8, %v539_v9  ;;  %v800_v16 = vsub.f32 %v1367_v10, %v748_v36  ;;  %vm753_vm7 = vcmp.eq.f32.partialorder %v1479_v57, 0.0  ;;  %vm758_vm8 = vcmp.eq.f32.partialorder %v1490_v30, inf  ;;  %v965_v7 = vld [vmem:[%s375_s28 + $0x1] sm:$0x1] }
  0xde   : > { %v750_v17 = vmul.f32 %v1179_v14, %v1479_v57  ;;  %1192 = vpow2.f32 %v824_v12  ;;  %v761_v28 = vand.u32 2147483648, %v1490_v30  ;;  %vm760_vm9 = vcmp.eq.f32.partialorder %v1490_v30, 0.0 }
  0xdf   : > { %v1181_v19 = vpop.eup %1180  ;;  %1194 = vrsqrt.f32 %v671_v15  ;;  %v826_v20 = vmul.f32 1.442695, %v800_v16  ;;  %vm765_vm10 = vcmp.eq.f32.partialorder %v1505_v49, inf  ;;  %v768_v38 = vand.u32 2147483648, %v1505_v49 }
  0xe0   : > { %v1183_v55 = vpop.eup %1182  ;;  %850 = vadd.xlane.f32.xlu1 %v1181_v19  ;;  %v752_v25 = vsel %vm751_vm6, %v1479_v57, %v750_v17  ;;  %vm767_vm11 = vcmp.eq.f32.partialorder %v1505_v49, 0.0  ;;  %vm772_vm12 = vcmp.eq.f32.partialorder %v1521_v24, inf  ;;  %v775_v47 = vand.u32 2147483648, %v1521_v24  ;;  %v871_v17 = vld [vmem:[%s1658_s4 + $0x8] sm:$0xff] }
  0xe1   : > { %v757_v26 = vmul.f32 %v1183_v55, %v1490_v30  ;;  %1196 = vpow2.f32 %v826_v20  ;;  %v755_v45 = vsel %vm753_vm7, %v754_v21, %v752_v25  ;;  %vm774_vm13 = vcmp.eq.f32.partialorder %v1521_v24, 0.0  ;;  %v870_v20 = vld [vmem:[%s1658_s4] sm:$0xff]  ;;  %v872_v21 = vld [vmem:[%s1658_s4 + $0x10] sm:$0xff]  ;;  %v873_v25 = vld [vmem:[%s1658_s4 + $0x18] sm:$0xff] }
  0xe2   : > { %v801_v27 = vsub.f32 %v1367_v10, %v755_v45  ;;  %vm779_vm14 = vcmp.eq.f32.partialorder %v671_v15, inf  ;;  %v782_v53 = vand.u32 2147483648, %v671_v15  ;;  %vm781_vm15 = vcmp.eq.f32.partialorder %v671_v15, 0.0 }
  0xe3   : > { %v1185_v29 = vpop.eup %1184  ;;  %v759_v31 = vsel %vm758_vm8, %v1490_v30, %v757_v26  ;;  %v943_v3 = vmul.f32 2.0, %v1360_v0  ;;  %vm947_vm0 = vcmask 1040384   ;;  %v966_v0 = vld [vmem:[%s379_s10 + $0x1] sm:$0x1]  ;;  %vm902_vm1 = vcmask 7168  }
  0xe4   : > { %v1187_v32 = vpop.eup %1186  ;;  %852 = vadd.xlane.f32.xlu0 %v1185_v29  ;;  %v828_v1 = vmul.f32 1.442695, %v801_v27  ;;  %v762_v34 = vsel %vm760_vm9, %v761_v28, %v759_v31  ;;  %v967_v8 = vsub.f32 %v965_v7, %v966_v0  ;;  %v874_v28 = vld [vmem:[%s1658_s4 + $0x20] sm:$0xff] }
  0xe5   : > { %v764_v57 = vmul.f32 %v1187_v32, %v1505_v49  ;;  %v802_v35 = vsub.f32 %v1367_v10, %v762_v34  ;;  %v1120_v4 = vadd.f32 -1.4142136e-06, %v943_v3  ;;  %v882_v0 = vld [vmem:[%s1658_s4 + $0x60] sm:$0xff] }
  0xe6   : > { %1198 = vpow2.f32 %v828_v1  ;;  %v968_v11 = vadd.f32 1e-06, %v967_v8  ;;  %v875_v1 = vld [vmem:[%s1658_s4 + $0x28] sm:$0xff] }
  0xe7   : > { %v1189_v39 = vpop.eup %1188  ;;  %v830_v40 = vmul.f32 1.442695, %v802_v35  ;;  %v766_v41 = vsel %vm765_vm10, %v1505_v49, %v764_v57  ;;  %v945_v5 = vmul.f32 1.442695, %v1120_v4 }
  0xe8   : > { %854 = vadd.xlane.f32.xlu1 %v1189_v39  ;;  %v769_v30 = vsel %vm767_vm11, %v768_v38, %v766_v41  ;;  %v969_v36 = vmul.f32 %v968_v11, %v968_v11 }
  0xe9   : > { %v1191_v42 = vpop.eup %1190  ;;  %1200 = vpow2.f32 %v830_v40  ;;  %v803_v37 = vsub.f32 %v1367_v10, %v769_v30  ;;  %v876_v40 = vld [vmem:[%s1658_s4 + $0x30] sm:$0xff] }
  0xea   : > { %v771_v43 = vmul.f32 %v1191_v42, %v1521_v24 }
  0xeb   : > { %v1193_v63 = vpop.eup %1192  ;;  %v832_v44 = vmul.f32 1.442695, %v803_v37 }
  0xec   : > { %v1195_v48 = vpop.eup %1194  ;;  %856 = vadd.xlane.f32.xlu0 %v1193_v63  ;;  %v773_v50 = vsel %vm772_vm12, %v1521_v24, %v771_v43  ;;  %v960_v24 = vld [vmem:[%s375_s28] sm:$0x1]  ;;  %v877_v43 = vld [vmem:[%s1658_s4 + $0x38] sm:$0xff]  ;;  %s385_s28 = scalar_lea.vmem %s1662_s8, %s1302_s15 }
  0xed   : > { %v778_v49 = vmul.f32 %v1195_v48, %v671_v15  ;;  %1202 = vpow2.f32 %v832_v44  ;;  %v776_v13 = vsel %vm774_vm13, %v775_v47, %v773_v50  ;;  %v962_v33 = vsub.f32 %v960_v24, %v961_v23 }
  0xee   : > { %v1197_v51 = vpop.eup %1196  ;;  %v804_v52 = vsub.f32 %v1367_v10, %v776_v13 }
  0xef   : > { %858 = vadd.xlane.f32.xlu1 %v1197_v51  ;;  %v780_v54 = vsel %vm779_vm14, %v671_v15, %v778_v49  ;;  %v963_v9 = vadd.f32 1e-06, %v962_v33  ;;  %v878_v49 = vld [vmem:[%s1658_s4 + $0x40] sm:$0xff] }
  0xf0   : > { %v834_v56 = vmul.f32 1.442695, %v804_v52  ;;  %v783_v58 = vsel %vm781_vm15, %v782_v53, %v780_v54  ;;  %v879_v54 = vld [vmem:[%s1658_s4 + $0x48] sm:$0xff] }
  0xf1   : > { %v805_v59 = vsub.f32 %v1367_v10, %v783_v58  ;;  %v964_v12 = vmul.f32 %v963_v9, %v963_v9 }
  0xf2   : > { %1204 = vpow2.f32 %v834_v56 }
  0xf3   : > { %v1199_v46 = vpop.eup %1198  ;;  %v836_v60 = vmul.f32 1.442695, %v805_v59  ;;  %v1564_v15 = vadd.f32 %v969_v36, %v964_v12  ;;  %v883_v36 = vld [vmem:[%s1658_s4 + $0x68] sm:$0xff] }
  0xf4   : > { %860 = vadd.xlane.f32.xlu0 %v1199_v46 }
  0xf5   : > { %1206 = vpow2.f32 %v836_v60  ;;  %vm973_vm2 = vcmp.eq.f32.partialorder %v1564_v15, inf  ;;  %v976_v3 = vand.u32 2147483648, %v1564_v15  ;;  %vm975_vm3 = vcmp.eq.f32.partialorder %v1564_v15, 0.0 }
  0xf6   : > { %v1201_v61 = vpop.eup %1200  ;;  %1208 = vpow2.f32 %v945_v5  ;;  %v881_v5 = vld [vmem:[%s1658_s4 + $0x58] sm:$0xff] }
  0xf7   : > { %862 = vadd.xlane.f32.xlu1 %v1201_v61  ;;  %1210 = vrsqrt.f32 %v1564_v15  ;;  %v880_v61 = vld [vmem:[%s1658_s4 + $0x50] sm:$0xff] }
  0xfa   : > { %v1203_v62 = vpop.eup %1202 }
  0xfb   : > { %864 = vadd.xlane.f32.xlu0 %v1203_v62 }
  0xff   : > { %v1205_v22 = vpop.eup %1204 }
 0x100   : > { %866 = vadd.xlane.f32.xlu1 %v1205_v22 }
 0x102   : > { %v1207_v2 = vpop.eup %1206 }
 0x103   : > { %868 = vadd.xlane.f32.xlu0 %v1207_v2  ;;  %v1209_v10 = vpop.eup %1208 }
 0x104   : > { %v948_v6 = vsel %vm947_vm0, %v1209_v10, 0.0  ;;  %v1211_v44 = vpop.eup %1210 }
 0x105   : > { %v972_v58 = vmul.f32 %v1211_v44, %v1564_v15 }
 0x107   : > { %949 = vadd.xlane.f32.xlu0 %v948_v6  ;;  %v974_v6 = vsel %vm973_vm2, %v1564_v15, %v972_v58 }
 0x108   : > { %v977_v11 = vsel %vm975_vm3, %v976_v3, %v974_v6 }
 0x151   : > { %v839_v14 = vpop.xlane.xlu0 %838 }
 0x152   : > { %v886_v45 = vmul.f32 %v870_v20, %v839_v14 }
 0x154   : > { %v903_v57 = vsel %vm902_vm1, %v886_v45, 0.0  ;;  %v884_v45 = vld [vmem:[%s1658_s4 + $0x70] sm:$0xff] }
 0x155   : > { %v841_v19 = vpop.xlane.xlu1 %840 }
 0x156   : > { %v887_v55 = vmul.f32 %v871_v17, %v841_v19  ;;  %v978_v19 = vsub.f32 0.0, %v977_v11 }
 0x158   : > { %v904_v31 = vsel %vm902_vm1, %v887_v55, 0.0  ;;  %v979_v55 = vld [vmem:[%s382_s24] sm:$0x1] }
 0x159   : > { %v843_v16 = vpop.xlane.xlu0 %842  ;;  %v905_v39 = vadd.f32 %v904_v31, %v903_v57 }
 0x15a   : > { %v888_v27 = vmul.f32 %v872_v21, %v843_v16 }
 0x15c   : > { %v906_v35 = vsel %vm902_vm1, %v888_v27, 0.0 }
 0x15d   : > { %v845_v26 = vpop.xlane.xlu0 %844  ;;  %v907_v37 = vadd.f32 %v906_v35, %v905_v39  ;;  %v885_v35 = vld [vmem:[%s1658_s4 + $0x78] sm:$0xff] }
 0x15e   : > { %v889_v32 = vmul.f32 %v873_v25, %v845_v26 }
 0x160   : > { %v908_v30 = vsel %vm902_vm1, %v889_v32, 0.0  ;;  %v981_v32 = vld [vmem:[%s385_s28] sm:$0x1] }
 0x161   : > { %v847_v29 = vpop.xlane.xlu1 %846  ;;  %v909_v50 = vadd.f32 %v908_v30, %v907_v37 }
 0x162   : > { %v890_v38 = vmul.f32 %v874_v28, %v847_v29  ;;  %v980_v28 = vadd.f32 %v979_v55, %v978_v19 }
 0x164   : > { %v910_v47 = vsel %vm902_vm1, %v890_v38, 0.0  ;;  %v986_v38 = vstv %s985_s25  ;;  %v982_v30 = vadd.f32 %v981_v32, %v980_v28 }
 0x165   : > { %v849_v34 = vpop.xlane.xlu0 %848  ;;  %v911_v53 = vadd.f32 %v910_v47, %v909_v50 }
 0x166   : > { %v891_v42 = vmul.f32 %v875_v1, %v849_v34  ;;  %v984_v1 = vand.u32 127, %v488_v18 }
 0x168   : > { %v912_v51 = vsel %vm902_vm1, %v891_v42, 0.0  ;;  %vm987_vm4 = vcmp.lt.s32.totalorder %v984_v1, %v986_v38 }
 0x169   : > { %v851_v41 = vpop.xlane.xlu1 %850  ;;  %v913_v60 = vadd.f32 %v912_v51, %v911_v53  ;;  %v988_v44 = vsel %vm987_vm4, %v982_v30, 0.0 }
 0x16a   : > { %v892_v48 = vmul.f32 %v876_v40, %v851_v41  ;;  %v989_v18 = vsel %vm947_vm0, %v988_v44, 0.0 }
 0x16c   : > { %v914_v59 = vsel %vm902_vm1, %v892_v48, 0.0 }
 0x16d   : > { %v853_v63 = vpop.xlane.xlu0 %852  ;;  %v915_v4 = vadd.f32 %v914_v59, %v913_v60 }
 0x16e   : > { %v893_v52 = vmul.f32 %v877_v43, %v853_v63 }
 0x170   : > { %v916_v22 = vsel %vm902_vm1, %v893_v52, 0.0 }
 0x171   : > { %v855_v13 = vpop.xlane.xlu1 %854  ;;  %v917_v7 = vadd.f32 %v916_v22, %v915_v4 }
 0x172   : > { %v894_v46 = vmul.f32 %v878_v49, %v855_v13 }
 0x174   : > { %v918_v24 = vsel %vm902_vm1, %v894_v46, 0.0 }
 0x175   : > { %v857_v56 = vpop.xlane.xlu0 %856  ;;  %v919_v12 = vadd.f32 %v918_v24, %v917_v7 }
 0x176   : > { %v895_v2 = vmul.f32 %v879_v54, %v857_v56 }
 0x178   : > { %v859_v62 = vpop.xlane.xlu1 %858  ;;  %v920_v8 = vsel %vm902_vm1, %v895_v2, 0.0 }
 0x179   : > { %v896_v23 = vmul.f32 %v880_v61, %v859_v62  ;;  %v921_v16 = vadd.f32 %v920_v8, %v919_v12 }
 0x17b   : > { %v922_v14 = vsel %vm902_vm1, %v896_v23, 0.0 }
 0x17c   : > { %v923_v25 = vadd.f32 %v922_v14, %v921_v16 }
 0x17d   : > { %v861_v10 = vpop.xlane.xlu0 %860 }
 0x17e   : > { %v897_v9 = vmul.f32 %v881_v5, %v861_v10 }
 0x180   : > { %v863_v33 = vpop.xlane.xlu1 %862  ;;  %v924_v20 = vsel %vm902_vm1, %v897_v9, 0.0 }
 0x181   : > { %v898_v15 = vmul.f32 %v882_v0, %v863_v33  ;;  %v925_v27 = vadd.f32 %v924_v20, %v923_v25 }
 0x183   : > { %v926_v26 = vsel %vm902_vm1, %v898_v15, 0.0 }
 0x184   : > { %v865_v17 = vpop.xlane.xlu0 %864  ;;  %v927_v34 = vadd.f32 %v926_v26, %v925_v27 }
 0x185   : > { %v899_v21 = vmul.f32 %v883_v36, %v865_v17 }
 0x187   : > { %v928_v29 = vsel %vm902_vm1, %v899_v21, 0.0 }
 0x188   : > { %v929_v39 = vadd.f32 %v928_v29, %v927_v34 }
 0x189   : > { %v867_v31 = vpop.xlane.xlu1 %866 }
 0x18a   : > { %v900_v57 = vmul.f32 %v884_v45, %v867_v31 }
 0x18c   : > { %v930_v40 = vsel %vm902_vm1, %v900_v57, 0.0  ;;  %v869_v41 = vpop.xlane.xlu0 %868 }
 0x18d   : > { %v901_v42 = vmul.f32 %v885_v35, %v869_v41  ;;  %v931_v37 = vadd.f32 %v930_v40, %v929_v39 }
 0x18f   : > { %v932_v43 = vsel %vm902_vm1, %v901_v42, 0.0 }
 0x190   : > { %v933_v63 = vadd.f32 %v932_v43, %v931_v37  ;;  %v950_v47 = vpop.xlane.xlu0 %949 }
 0x191   : > { %v951_v48 = vrot.slane %v950_v47, 4 }
 0x192   : > { %934 = vadd.xlane.f32.xlu1 %v933_v63 }
 0x193   : > { %v952_v50 = vadd.f32 %v951_v48, %v950_v47 }
 0x195   : > { %v953_v49 = vrot.slane %v952_v50, 2 }
 0x196   : > { %990 = vadd.xlane.f32.xlu1 %v989_v18 }
 0x197   : > { %v954_v53 = vadd.f32 %v953_v49, %v952_v50 }
 0x199   : > { %v955_v60 = vrot.slane %v954_v53, 1 }
 0x19b   : > { %v956_v3 = vadd.f32 %v955_v60, %v954_v53 }
 0x21b   : > { %v935_v13 = vpop.xlane.xlu1 %934 }
 0x21c   : > { %v936_v51 = vrot.slane %v935_v13, 4 }
 0x21e   : > { %v937_v52 = vadd.f32 %v936_v51, %v935_v13 }
 0x21f   : > { %v991_v54 = vpop.xlane.xlu1 %990 }
 0x220   : > { %v938_v56 = vrot.slane %v937_v52, 2  ;;  %v992_v58 = vrot.slane %v991_v54, 4 }
 0x222   : > { %v993_v59 = vadd.f32 %v992_v58, %v991_v54  ;;  %v939_v46 = vadd.f32 %v938_v56, %v937_v52 }
 0x224   : > { %v994_v61 = vrot.slane %v993_v59, 2  ;;  %v940_v62 = vrot.slane %v939_v46, 1 }
 0x226   : > { %v995_v22 = vadd.f32 %v994_v61, %v993_v59  ;;  %v941_v2 = vadd.f32 %v940_v62, %v939_v46 }
 0x228   : > { %1124 = vpush %v941_v2  ;;  %v996_v4 = vrot.slane %v995_v22, 1 }
 0x229   : > { %1126 = vpush %v956_v3 }
 0x22a   : > { %v997_v5 = vadd.f32 %v996_v4, %v995_v22 }
 0x22c   : > { %1128 = vpush %v997_v5 }
 0x259   : > { %s1125_s11 = spop %1124 }
 0x25a   : > { %s1127_s12 = spop %1126 }
 0x25b   : > { %s958_s13 = ssub.f32 %s1125_s11, %s1127_s12 }
 0x25d   : > { %s959_s17 = smul.f32 0.5, %s958_s13  ;;  %s1129_s18 = spop %1128 }
 0x25f   : > { %s999_s22 = ssub.f32 %s1129_s18, %s959_s17 }
 0x261   : > { %v1000_v10 = vstv %s999_s22 }
 0x262   : > { %1001 = vst [vmem:[%s389_s21] sm:$0xff] %v1000_v10 }
 0x263 PF: > { %s25_s14 = sadd.s32 1, %s1232_s14  }
 0x264   : > { %p22_p9 = scmp.ge.s32.totalorder %s25_s14, 6  }
 0x266   :  { %24 = sbr.rel (!%p22_p9) target bundleno = 16 (0x10), region = 97 }

</bundles_post_ra>
